<compile_context>
chip_gen: v7x
topology: tpu7x:2x2x1
jax: 0.10.0
libtpu: 0.0.40
codegen_flags: <defaults>
</compile_context>

<pallas_src>
import functools

import jax
import jax.numpy as jnp
from jax.experimental import pallas as pl
from jax.experimental.pallas import tpu as pltpu


def _round_up(x, m):
    return ((x + m - 1) // m) * m


# --------------------------------------------------------------------------- #
# Kernel
# --------------------------------------------------------------------------- #
def mlp_kernel(x_ref, w1_ref, b1_ref, w2_ref, b2_ref, w3_ref, b3_ref, o_ref,
               *, n_out):
    """One batch tile: 3 fused (matmul + bias [+ ReLU]) layers + masked log-softmax.

    x_ref arrives in its storage dtype; the cast to the MXU operand dtype
    happens here (free filler -- the kernel is HBM/DMA bound), so the wrapper
    never materializes a padded/cast copy of x in HBM.
    """
    compute_dtype = w1_ref.dtype

    x = x_ref[...].astype(compute_dtype)                     # (TB, D_in_p)

    # Layer 1: Linear + ReLU (f32 accumulation on the MXU).
    h = jnp.dot(x, w1_ref[...], preferred_element_type=jnp.float32) + b1_ref[...]
    h = jnp.maximum(h, 0.0)

    # Layer 2: Linear + ReLU.
    h = jnp.dot(h.astype(compute_dtype), w2_ref[...],
                preferred_element_type=jnp.float32) + b2_ref[...]
    h = jnp.maximum(h, 0.0)

    # Layer 3 (output): Linear, no activation.
    z = jnp.dot(h.astype(compute_dtype), w3_ref[...],
                preferred_element_type=jnp.float32) + b3_ref[...]

    # Exclude zero-padded logit columns from the softmax normalizer.
    if n_out < z.shape[1]:
        col = jax.lax.broadcasted_iota(jnp.int32, z.shape, 1)
        z = jnp.where(col < n_out, z, -jnp.inf)

    # LogSoftmax over dim=1 (numerically stable); elementwise math stays f32.
    m = jnp.max(z, axis=1, keepdims=True)
    s = z - m
    lse = jnp.log(jnp.sum(jnp.exp(s), axis=1, keepdims=True))
    o_ref[...] = (s - lse).astype(o_ref.dtype)


# --------------------------------------------------------------------------- #
# One-time parameter preparation (hoisted out of the per-call path)
# --------------------------------------------------------------------------- #
def prepare_params(params, *, compute_dtype=jnp.bfloat16):
    """Pad every feature dim to a multiple of 128 and cast MXU operands ONCE.

    Call at init / param-load time, not per forward call: this removes six
    per-call pad+convert ops (and their HBM writes) from the critical path.
    Weights are stored transposed (in_dim, out_dim); biases are (1, out_dim)
    and stay f32 (bias add / ReLU / log-softmax are all f32 in-kernel).

    bf16 operands are recommended on v5e, v6e and v7x alike: the MXU supports
    bf16 natively on all three and the kernel is HBM-bandwidth-bound, so
    halving weight/x traffic is nearly free accuracy-wise (f32 accumulation).
    """
    w1, b1 = params["w1"], params["b1"]
    w2, b2 = params["w2"], params["b2"]
    w3, b3 = params["w3"], params["b3"]
    D_in, H1 = w1.shape
    H2, D_out = w2.shape[1], w3.shape[1]

    D_in_p = _round_up(D_in, 128)
    H1_p, H2_p, D_out_p = (_round_up(d, 128) for d in (H1, H2, D_out))

    f32 = jnp.float32
    return {
        "w1": jnp.pad(w1, ((0, D_in_p - D_in), (0, H1_p - H1))).astype(compute_dtype),
        "w2": jnp.pad(w2, ((0, H1_p - H1), (0, H2_p - H2))).astype(compute_dtype),
        "w3": jnp.pad(w3, ((0, H2_p - H2), (0, D_out_p - D_out))).astype(compute_dtype),
        "b1": jnp.pad(b1, ((0, 0), (0, H1_p - H1))).astype(f32),
        "b2": jnp.pad(b2, ((0, 0), (0, H2_p - H2))).astype(f32),
        "b3": jnp.pad(b3, ((0, 0), (0, D_out_p - D_out))).astype(f32),
    }


# --------------------------------------------------------------------------- #
# Forward wrapper
# --------------------------------------------------------------------------- #
def mlp_forward(x, prepared, *, d_out, tb=512, out_dtype=jnp.float32):
    """Fused MLP forward.

    x:         (B, ...) -- flattened to (B, D_in) like torch.reshape(x, (B,-1)).
               Passed to the kernel in its storage dtype (no wrapper pad/cast
               copy when D_in is already 128-aligned); cast happens in-kernel.
    prepared:  output of prepare_params() (pre-padded / pre-cast, done once).
    d_out:     true (unpadded) number of output classes.
    tb:        batch tile. 512-1024 recommended (per-step overhead ~0.35us);
               shrunk adaptively for small B so padding waste stays low. With
               B > tb the grid has >=2 steps, so the "parallel" axis actually
               engages both v7x TensorCores.
    out_dtype: jnp.float32 (exact) or jnp.bfloat16 (~halves output writeback
               when the consumer tolerates it).
    """
    B = x.shape[0]
    x_flat = x.reshape(B, -1)
    D_in = x_flat.shape[1]

    w1, b1 = prepared["w1"], prepared["b1"]
    w2, b2 = prepared["w2"], prepared["b2"]
    w3, b3 = prepared["w3"], prepared["b3"]
    D_in_p, H1_p = w1.shape
    H2_p, D_out_p = w2.shape[1], w3.shape[1]
    assert D_in_p == _round_up(D_in, 128), "prepared params don't match x feature dim"

    # Adaptive batch tiling: keep the tile count implied by `tb`, shrink the
    # tile to fit B so padded (junk) rows stay a small fraction of the DMA
    # traffic.  16-row granularity keeps sublane tiling happy for f32 & bf16.
    n_tiles = int(pl.cdiv(B, tb))
    tb_eff = _round_up(int(pl.cdiv(B, n_tiles)), 16)
    B_p = n_tiles * tb_eff

    # Only pad if actually needed; no dtype cast here (kernel casts in-register).
    if B_p != B or D_in_p != D_in:
        x_in = jnp.pad(x_flat, ((0, B_p - B), (0, D_in_p - D_in)))
    else:
        x_in = x_flat

    out_itemsize = jnp.dtype(out_dtype).itemsize

    # Advisory cost estimate: the flops/bytes the call actually executes/moves.
    flops = 2 * B_p * (D_in_p * H1_p + H1_p * H2_p + H2_p * D_out_p)
    transcendentals = B_p * (D_out_p + 1)            # exp per logit + log per row
    bytes_accessed = int(
        x_in.size * x_in.dtype.itemsize
        + sum(a.size * a.dtype.itemsize for a in (w1, b1, w2, b2, w3, b3))
        + B_p * D_out_p * out_itemsize)

    # Scoped-VMEM request sized from the real tile footprint (double-buffered
    # x/out tiles + resident weights + f32 working set), with headroom.
    # Floor 32 MiB (>= every generation's default), cap 48 MiB (< v7x's 64 MiB).
    x_tile_b = tb_eff * D_in_p * x_in.dtype.itemsize
    out_tile_b = tb_eff * D_out_p * out_itemsize
    weights_b = sum(a.size * a.dtype.itemsize for a in (w1, b1, w2, b2, w3, b3))
    interm_b = tb_eff * (D_in_p + H1_p + H2_p + 2 * D_out_p) * 4
    vmem_needed = 2 * (x_tile_b + out_tile_b) + 2 * weights_b + interm_b
    vmem_limit = int(min(max(2 * vmem_needed, 32 << 20), 48 << 20))

    def resident(shape):
        # Full-array block, same block index at every grid step -> DMA'd once,
        # stays VMEM-resident across the whole batch grid.
        return pl.BlockSpec(shape, lambda i: (0, 0))

    kernel = functools.partial(mlp_kernel, n_out=d_out)

    out = pl.pallas_call(
        kernel,
        out_shape=jax.ShapeDtypeStruct((B_p, D_out_p), out_dtype),
        grid=(n_tiles,),
        in_specs=[
            pl.BlockSpec((tb_eff, D_in_p), lambda i: (i, 0)),   # x streams per tile
            resident((D_in_p, H1_p)), resident((1, H1_p)),
            resident((H1_p, H2_p)),   resident((1, H2_p)),
            resident((H2_p, D_out_p)), resident((1, D_out_p)),
        ],
        out_specs=pl.BlockSpec((tb_eff, D_out_p), lambda i: (i, 0)),
        compiler_params=pltpu.CompilerParams(
            dimension_semantics=("parallel",),
            vmem_limit_bytes=vmem_limit),
        cost_estimate=pl.CostEstimate(
            flops=flops, transcendentals=transcendentals,
            bytes_accessed=bytes_accessed),
    )(x_in, w1, b1, w2, b2, w3, b3)

    # Drop batch padding and padded logit columns.
    return out[:B, :d_out]


# --------------------------------------------------------------------------- #
# Deterministic init mimicking nn.Linear default (uniform +/- 1/sqrt(fan_in))
# --------------------------------------------------------------------------- #
def init_params(key, D_in, hidden_dims, D_out):
    all_dims = [D_in, *hidden_dims, D_out]
    params = {}
    for idx, (fan_in, fan_out) in enumerate(zip(all_dims[:-1], all_dims[1:]), start=1):
        key, kw, kb = jax.random.split(key, 3)
        bound = 1.0 / (fan_in ** 0.5)
        # Stored transposed: (in_dim, out_dim)
        params[f"w{idx}"] = jax.random.uniform(
            kw, (fan_in, fan_out), jnp.float32, -bound, bound)
        # Bias kept 2-D (1, out_dim); broadcasts over batch.
        params[f"b{idx}"] = jax.random.uniform(
            kb, (1, fan_out), jnp.float32, -bound, bound)
    return params


if __name__ == "__main__":
    key = jax.random.PRNGKey(0)
    kx, kp = jax.random.split(key)

    # Small shapes consistent with the module: x is (B, C, H, W) -> D_in = C*H*W
    B, C, H, W = 2, 4, 16, 16
    D_in = C * H * W          # 1024 (already 128-aligned -> no x pad copy)
    hidden_dims = [64, 32]
    D_out = 10

    x = jax.random.normal(kx, (B, C, H, W), jnp.float32)
    params = init_params(kp, D_in, hidden_dims, D_out)

    # Pure-JAX reference (same math as the torch module).
    xf = x.reshape(B, -1)
    h = jnp.maximum(xf @ params["w1"] + params["b1"], 0.0)
    h = jnp.maximum(h @ params["w2"] + params["b2"], 0.0)
    z = h @ params["w3"] + params["b3"]
    ref = jax.nn.log_softmax(z, axis=1)

    # f32-operand path: tight match (exact semantics).
    prep_f32 = prepare_params(params, compute_dtype=jnp.float32)
    y32 = mlp_forward(x, prep_f32, d_out=D_out, out_dtype=jnp.float32)
    jax.block_until_ready(y32)
    assert y32.shape == (B, D_out)
    assert jnp.allclose(y32, ref, atol=1e-5, rtol=1e-5)

    # bf16-operand + bf16-output path (recommended on v5e/v6e/v7x: halves the
    # dominant x DMA and the output writeback; f32 accumulation kept).
    prep_bf16 = prepare_params(params, compute_dtype=jnp.bfloat16)
    ybf = mlp_forward(x, prep_bf16, d_out=D_out, out_dtype=jnp.bfloat16)
    jax.block_until_ready(ybf)
    assert ybf.shape == (B, D_out)
    assert jnp.allclose(ybf.astype(jnp.float32), ref, atol=5e-2, rtol=5e-2)

    # TODO(synk): fp8 operand path for v7x (MXU fp8, no int8) left unimplemented.
    print("KERNEL_OK")
</pallas_src>

<mosaic_0001>
module attributes {stable_mosaic.version = 11 : i64} {
  func.func @mlp_kernel(%arg0: i32, %arg1: memref<16x1024xf32, #tpu.memory_space<vmem>>, %arg2: memref<1024x128xf32, #tpu.memory_space<vmem>>, %arg3: memref<1x128xf32, #tpu.memory_space<vmem>>, %arg4: memref<128x128xf32, #tpu.memory_space<vmem>>, %arg5: memref<1x128xf32, #tpu.memory_space<vmem>>, %arg6: memref<128x128xf32, #tpu.memory_space<vmem>>, %arg7: memref<1x128xf32, #tpu.memory_space<vmem>>, %arg8: memref<16x128xf32, #tpu.memory_space<vmem>>) attributes {dimension_semantics = [#tpu.dimension_semantics<parallel>], iteration_bounds = array<i64: 1>, scalar_prefetch = 0 : i64, scratch_operands = 0 : i64, tpu.core_type = #tpu.core_type<tc>, window_params = [{transform_indices = @transform_0, window_bounds = array<i64: 16, 1024>}, {pipeline_mode = #tpu.pipeline_mode<synchronous>, transform_indices = @transform_1, window_bounds = array<i64: 1024, 128>}, {pipeline_mode = #tpu.pipeline_mode<synchronous>, transform_indices = @transform_2, window_bounds = array<i64: 1, 128>}, {pipeline_mode = #tpu.pipeline_mode<synchronous>, transform_indices = @transform_3, window_bounds = array<i64: 128, 128>}, {pipeline_mode = #tpu.pipeline_mode<synchronous>, transform_indices = @transform_4, window_bounds = array<i64: 1, 128>}, {pipeline_mode = #tpu.pipeline_mode<synchronous>, transform_indices = @transform_5, window_bounds = array<i64: 128, 128>}, {pipeline_mode = #tpu.pipeline_mode<synchronous>, transform_indices = @transform_6, window_bounds = array<i64: 1, 128>}, {transform_indices = @transform_7, window_bounds = array<i64: 16, 128>}]} {
    %c0 = arith.constant 0 : index
    %c0_0 = arith.constant 0 : index
    %0 = vector.load %arg1[%c0, %c0_0] : memref<16x1024xf32, #tpu.memory_space<vmem>>, vector<16x1024xf32>
    %c0_1 = arith.constant 0 : index
    %c0_2 = arith.constant 0 : index
    %1 = vector.load %arg2[%c0_1, %c0_2] : memref<1024x128xf32, #tpu.memory_space<vmem>>, vector<1024x128xf32>
    %cst = arith.constant dense<0.000000e+00> : vector<16x128xf32>
    %2 = tpu.matmul %0, %1, %cst {dimension_numbers = #tpu.dot_dimension_numbers<[1], [0], [0], [1], [0, 0, 1, 1], [], []>} : vector<16x1024xf32>, vector<1024x128xf32>, vector<16x128xf32> -> vector<16x128xf32>
    %c0_3 = arith.constant 0 : index
    %c0_4 = arith.constant 0 : index
    %3 = vector.load %arg3[%c0_3, %c0_4] : memref<1x128xf32, #tpu.memory_space<vmem>>, vector<1x128xf32>
    %4 = vector.broadcast %3 : vector<1x128xf32> to vector<16x128xf32>
    %5 = arith.addf %2, %4 : vector<16x128xf32>
    %cst_5 = arith.constant 0.000000e+00 : f32
    %6 = vector.broadcast %cst_5 : f32 to vector<16x128xf32>
    %7 = arith.maximumf %5, %6 : vector<16x128xf32>
    %c0_6 = arith.constant 0 : index
    %c0_7 = arith.constant 0 : index
    %8 = vector.load %arg4[%c0_6, %c0_7] : memref<128x128xf32, #tpu.memory_space<vmem>>, vector<128x128xf32>
    %cst_8 = arith.constant dense<0.000000e+00> : vector<16x128xf32>
    %9 = tpu.matmul %7, %8, %cst_8 {dimension_numbers = #tpu.dot_dimension_numbers<[1], [0], [0], [1], [0, 0, 1, 1], [], []>} : vector<16x128xf32>, vector<128x128xf32>, vector<16x128xf32> -> vector<16x128xf32>
    %c0_9 = arith.constant 0 : index
    %c0_10 = arith.constant 0 : index
    %10 = vector.load %arg5[%c0_9, %c0_10] : memref<1x128xf32, #tpu.memory_space<vmem>>, vector<1x128xf32>
    %11 = vector.broadcast %10 : vector<1x128xf32> to vector<16x128xf32>
    %12 = arith.addf %9, %11 : vector<16x128xf32>
    %cst_11 = arith.constant 0.000000e+00 : f32
    %13 = vector.broadcast %cst_11 : f32 to vector<16x128xf32>
    %14 = arith.maximumf %12, %13 : vector<16x128xf32>
    %c0_12 = arith.constant 0 : index
    %c0_13 = arith.constant 0 : index
    %15 = vector.load %arg6[%c0_12, %c0_13] : memref<128x128xf32, #tpu.memory_space<vmem>>, vector<128x128xf32>
    %cst_14 = arith.constant dense<0.000000e+00> : vector<16x128xf32>
    %16 = tpu.matmul %14, %15, %cst_14 {dimension_numbers = #tpu.dot_dimension_numbers<[1], [0], [0], [1], [0, 0, 1, 1], [], []>} : vector<16x128xf32>, vector<128x128xf32>, vector<16x128xf32> -> vector<16x128xf32>
    %c0_15 = arith.constant 0 : index
    %c0_16 = arith.constant 0 : index
    %17 = vector.load %arg7[%c0_15, %c0_16] : memref<1x128xf32, #tpu.memory_space<vmem>>, vector<1x128xf32>
    %18 = vector.broadcast %17 : vector<1x128xf32> to vector<16x128xf32>
    %19 = arith.addf %16, %18 : vector<16x128xf32>
    %20 = tpu.iota {dimensions = array<i32: 1>} : vector<16x128xi32>
    %c10_i32 = arith.constant 10 : i32
    %21 = vector.broadcast %c10_i32 : i32 to vector<16x128xi32>
    %22 = arith.cmpi slt, %20, %21 : vector<16x128xi32>
    %cst_17 = arith.constant 0xFF800000 : f32
    %23 = vector.broadcast %cst_17 : f32 to vector<16x128xf32>
    %24 = arith.select %22, %19, %23 : vector<16x128xi1>, vector<16x128xf32>
    %cst_18 = arith.constant dense<0xFF800000> : vector<16xf32>
    %25 = vector.multi_reduction <maximumf>, %24, %cst_18 [1] : vector<16x128xf32> to vector<16xf32>
    %26 = vector.shape_cast %25 : vector<16xf32> to vector<16x1xf32>
    %27 = vector.broadcast %26 : vector<16x1xf32> to vector<16x128xf32>
    %28 = arith.subf %24, %27 : vector<16x128xf32>
    %29 = math.exp %28 : vector<16x128xf32>
    %cst_19 = arith.constant dense<0.000000e+00> : vector<16xf32>
    %30 = vector.multi_reduction <add>, %29, %cst_19 [1] : vector<16x128xf32> to vector<16xf32>
    %31 = vector.shape_cast %30 : vector<16xf32> to vector<16x1xf32>
    %32 = math.log %31 : vector<16x1xf32>
    %33 = vector.broadcast %32 : vector<16x1xf32> to vector<16x128xf32>
    %34 = arith.subf %28, %33 : vector<16x128xf32>
    %c0_20 = arith.constant 0 : index
    %c0_21 = arith.constant 0 : index
    %35 = vector.load %arg8[%c0_20, %c0_21] : memref<16x128xf32, #tpu.memory_space<vmem>>, vector<16x128xf32>
    tpu.vector_store %arg8[%c0_20, %c0_21], %34 {strides = array<i32>} : memref<16x128xf32, #tpu.memory_space<vmem>>, vector<16x128xf32>,
    return
  }
  func.func @transform_0(%arg0: i32) -> (i32, i32) {
    %c0_i32 = arith.constant 0 : i32
    %c0_i32_0 = arith.constant 0 : i32
    return %arg0, %c0_i32 : i32, i32
  }
  func.func @transform_1(%arg0: i32) -> (i32, i32) {
    %c0_i32 = arith.constant 0 : i32
    %c0_i32_0 = arith.constant 0 : i32
    %c0_i32_1 = arith.constant 0 : i32
    return %c0_i32, %c0_i32_0 : i32, i32
  }
  func.func @transform_2(%arg0: i32) -> (i32, i32) {
    %c0_i32 = arith.constant 0 : i32
    %c0_i32_0 = arith.constant 0 : i32
    %c0_i32_1 = arith.constant 0 : i32
    return %c0_i32, %c0_i32_0 : i32, i32
  }
  func.func @transform_3(%arg0: i32) -> (i32, i32) {
    %c0_i32 = arith.constant 0 : i32
    %c0_i32_0 = arith.constant 0 : i32
    %c0_i32_1 = arith.constant 0 : i32
    return %c0_i32, %c0_i32_0 : i32, i32
  }
  func.func @transform_4(%arg0: i32) -> (i32, i32) {
    %c0_i32 = arith.constant 0 : i32
    %c0_i32_0 = arith.constant 0 : i32
    %c0_i32_1 = arith.constant 0 : i32
    return %c0_i32, %c0_i32_0 : i32, i32
  }
  func.func @transform_5(%arg0: i32) -> (i32, i32) {
    %c0_i32 = arith.constant 0 : i32
    %c0_i32_0 = arith.constant 0 : i32
    %c0_i32_1 = arith.constant 0 : i32
    return %c0_i32, %c0_i32_0 : i32, i32
  }
  func.func @transform_6(%arg0: i32) -> (i32, i32) {
    %c0_i32 = arith.constant 0 : i32
    %c0_i32_0 = arith.constant 0 : i32
    %c0_i32_1 = arith.constant 0 : i32
    return %c0_i32, %c0_i32_0 : i32, i32
  }
  func.func @transform_7(%arg0: i32) -> (i32, i32) {
    %c0_i32 = arith.constant 0 : i32
    %c0_i32_0 = arith.constant 0 : i32
    return %arg0, %c0_i32 : i32, i32
  }
}

</mosaic_0001>

<bundles_post_ra>
// kernel: tpu_custom_call.1
= control target key start
LH: loop header
LB: loop body
LE: loop exit
PB: predicated region body
PF: predicated region fallthrough
CT: control target
= control target key end

     0   :  { %12 = vsyncpa [#allocation3], 0  ;;  %s1504_s0 = inlined_call_operand.hbm [shape: f32[16,1024], index: 0, kind: input, shape index: {}]   ;;  %s1505_s1 = inlined_call_operand.hbm [shape: f32[1024,128], index: 1, kind: input, shape index: {}]   ;;  %s1506_s2 = inlined_call_operand.vmem [shape: f32[1,128], index: 2, kind: input, shape index: {}]   ;;  %s1507_s3 = inlined_call_operand.hbm [shape: f32[128,128], index: 3, kind: input, shape index: {}]   ;;  %s1508_s4 = inlined_call_operand.vmem [shape: f32[1,128], index: 4, kind: input, shape index: {}]   ;;  %s1509_s5 = inlined_call_operand.hbm [shape: f32[128,128], index: 5, kind: input, shape index: {}]   ;;  %s1510_s6 = inlined_call_operand.vmem [shape: f32[1,128], index: 6, kind: input, shape index: {}]   ;;  %s1511_s7 = inlined_call_operand.hbm [shape: f32[16,128], index: 7, kind: output, shape index: {}]  }
   0x1   :  { %13 = vsyncpa [#allocation6], 0 }
   0x2   :  { %14 = vsyncpa [#allocation9], 0 }
   0x3   :  { %15 = vsyncpa [#allocation4], 0  ;;  %s1367_s24 = smov [#allocation5]   ;;  %s1249_s28 = scalar_lea.hbm %s1505_s1, 16384 }
   0x4   :  { %s33_s25 = sshll.u32 %s1367_s24, 4  ;;  %p1250_p0 = scmp.ne.s32.totalorder %s1505_s1, %s1249_s28  ;;  %s34_s25 = int_to_ptr.vmem [resolvable:$true] %s33_s25 }
   0x5   :  { %p1253_p1 = scmp.lt.u32.totalorder %s1249_s28, %s1505_s1 }
   0x7   :  { %p1255_p2 = pnand %p1253_p1, %p1250_p0 }
   0x9   :  { %1258 = shalt.err (!%p1255_p2)
}
   0xa   :  { %s1259_s10 = scalar_lea.vmem %s34_s25, 16384  ;;  %p1264_p4 = scmp.lt.s32.totalorder %s34_s25, %s34_s25 }
   0xb   :  { %p1260_p3 = scmp.ne.s32.totalorder %s34_s25, %s1259_s10  ;;  %p1265_p5 = scmp.lt.s32.totalorder %s1259_s10, %s1259_s10 }
   0xd   :  { %p1266_p6 = por %p1265_p5, %p1264_p4 }
   0xf   :  { %p1267_p7 = pnand %p1266_p6, %p1260_p3 }
  0x11   :  { %1270 = shalt.err (!%p1267_p7)
}
  0x12   :  { %s1368_s11 = smov 128   ;;  %s1369_s12 = smov 8  }
  0x13   :  { %39 = dma.hbm_to_vmem [thread:$0]  %s1505_s1, 16384, %s34_s25, [#allocation6], %s1368_s11, %s1368_s11, %s1369_s12  }
  0x14   :  { %s1370_s15 = smov [#allocation2]   ;;  %s1271_s19 = scalar_lea.hbm %s1504_s0, 2048 }
  0x15   :  { %s21_s16 = sshll.u32 %s1370_s15, 4  ;;  %p1272_p8 = scmp.ne.s32.totalorder %s1504_s0, %s1271_s19  ;;  %s22_s16 = int_to_ptr.vmem [resolvable:$true] %s21_s16 }
  0x16   :  { %p1275_p9 = scmp.lt.u32.totalorder %s1271_s19, %s1504_s0 }
  0x18   :  { %p1277_p10 = pnand %p1275_p9, %p1272_p8 }
  0x1a   :  { %1280 = shalt.err (!%p1277_p10)
}
  0x1b   :  { %s1281_s24 = scalar_lea.vmem %s22_s16, 2048  ;;  %p1286_p12 = scmp.lt.s32.totalorder %s22_s16, %s22_s16 }
  0x1c   :  { %p1282_p11 = scmp.ne.s32.totalorder %s22_s16, %s1281_s24  ;;  %p1287_p13 = scmp.lt.s32.totalorder %s1281_s24, %s1281_s24 }
  0x1e   :  { %p1288_p0 = por %p1287_p13, %p1286_p12 }
  0x20   :  { %p1289_p1 = pnand %p1288_p0, %p1282_p11 }
  0x22   :  { %1292 = shalt.err (!%p1289_p1)
}
  0x23   :  { %s1371_s1 = smov 1024   ;;  %s1372_s25 = smov 64  }
  0x24   :  { %27 = dma.hbm_to_vmem [thread:$0]  %s1504_s0, 2048, %s22_s16, [#allocation3], %s1371_s1, %s1371_s1, %s1372_s25  }
  0x25   :  { %s1373_s28 = smov [#allocation7]   ;;  %s1374_s30 = smov [#allocation8]  }
  0x26   :  { %s47_s29 = sshll.u32 %s1373_s28, 4  ;;  %s61_s8 = sshll.u32 %s1374_s30, 4  ;;  %s48_s29 = int_to_ptr.vmem [resolvable:$true] %s47_s29  ;;  %s1443_s8 = int_to_ptr.vmem [resolvable:$true] %s61_s8 }
  0x27   :  { %s1293_s13 = scalar_lea.hbm %s1507_s3, 2048 }
  0x28   :  { %p1294_p2 = scmp.ne.s32.totalorder %s1507_s3, %s1293_s13  ;;  %p1297_p3 = scmp.lt.u32.totalorder %s1293_s13, %s1507_s3 }
  0x2a   :  { %p1299_p4 = pnand %p1297_p3, %p1294_p2 }
  0x2c   :  { %1302 = shalt.err (!%p1299_p4)
}
  0x2d   :  { %s1303_s0 = scalar_lea.vmem %s48_s29, 2048  ;;  %p1308_p6 = scmp.lt.s32.totalorder %s48_s29, %s48_s29 }
  0x2e   :  { %p1304_p5 = scmp.ne.s32.totalorder %s48_s29, %s1303_s0  ;;  %p1309_p7 = scmp.lt.s32.totalorder %s1303_s0, %s1303_s0 }
  0x30   :  { %p1310_p8 = por %p1309_p7, %p1308_p6 }
  0x32   :  { %p1311_p9 = pnand %p1310_p8, %p1304_p5 }
  0x34   :  { %1314 = shalt.err (!%p1311_p9)
}
  0x35   :  { %53 = dma.hbm_to_vmem [thread:$0]  %s1507_s3, 2048, %s48_s29, [#allocation6], %s1368_s11, %s1368_s11, %s1369_s12  }
  0x36   :  { %s1315_s22 = scalar_lea.hbm %s1509_s5, 2048 }
  0x37   :  { %p1316_p10 = scmp.ne.s32.totalorder %s1509_s5, %s1315_s22  ;;  %p1319_p11 = scmp.lt.u32.totalorder %s1315_s22, %s1509_s5 }
  0x39   :  { %p1321_p12 = pnand %p1319_p11, %p1316_p10 }
  0x3b   :  { %1324 = shalt.err (!%p1321_p12)
}
  0x3c   :  { %s1325_s26 = scalar_lea.vmem %s1443_s8, 2048  ;;  %p1330_p0 = scmp.lt.s32.totalorder %s1443_s8, %s1443_s8 }
  0x3d   :  { %p1326_p13 = scmp.ne.s32.totalorder %s1443_s8, %s1325_s26  ;;  %p1331_p1 = scmp.lt.s32.totalorder %s1325_s26, %s1325_s26 }
  0x3f   :  { %p1332_p2 = por %p1331_p1, %p1330_p0 }
  0x41   :  { %p1333_p3 = pnand %p1332_p2, %p1326_p13 }
  0x43   :  { %1336 = shalt.err (!%p1333_p3)
}
  0x44   :  { %67 = dma.hbm_to_vmem [thread:$0]  %s1509_s5, 2048, %s1443_s8, [#allocation9], %s1368_s11, %s1368_s11, %s1369_s12  }
  0x45   :  { %1359 = dma.done.wait [#allocation3], 2048  }
  0x46   :  { %1360 = vsyncadd [#allocation3], 4294965248 }
  0x47   :  { %1361 = dma.done.wait [#allocation6], 18432  }
  0x48   :  { %1362 = vsyncadd [#allocation6], 4294948864 }
  0x49   :  { %1363 = dma.done.wait [#allocation9], 2048  }
  0x4a   :  { %1364 = vsyncadd [#allocation9], 4294965248  ;;  %v114_v0 = vld [vmem:[#allocation5 + $0x80] sm:$0xff]  ;;  %v115_v1 = vld [vmem:[#allocation5 + $0x88] sm:$0xff] }
  0x4b   :  { %v98_v2 = vld [vmem:[#allocation5] sm:$0xff]  ;;  %v1040_v3 = vpack.c.bf16 %v115_v1, %v114_v0  ;;  %v99_v4 = vld [vmem:[#allocation5 + $0x8] sm:$0xff]  ;;  %v116_v11 = vld [vmem:[#allocation5 + $0x90] sm:$0xff] }
  0x4c   :  { %v146_v5 = vld [vmem:[#allocation5 + $0x180] sm:$0xff]  ;;  %v147_v6 = vld [vmem:[#allocation5 + $0x188] sm:$0xff]  ;;  %v1042_v7 = vpack.c.bf16 %v99_v4, %v98_v2  ;;  %v117_v13 = vld [vmem:[#allocation5 + $0x98] sm:$0xff] }
  0x4d   :  { %v1072_v8 = vpack.c.bf16 %v147_v6, %v146_v5  ;;  %v130_v9 = vld [vmem:[#allocation5 + $0x100] sm:$0xff]  ;;  %v131_v10 = vld [vmem:[#allocation5 + $0x108] sm:$0xff]  ;;  %1041 = vmatprep.subr.bf16.mxu0 %v1040_v3  ;;  %v100_v14 = vld [vmem:[#allocation5 + $0x10] sm:$0xff]  ;;  %v1044_v16 = vpack.c.bf16 %v117_v13, %v116_v11 }
  0x4e   :  { %v1074_v12 = vpack.c.bf16 %v131_v10, %v130_v9  ;;  %v101_v15 = vld [vmem:[#allocation5 + $0x18] sm:$0xff]  ;;  %1043 = vmatpush3.bf16.msra.mxu0 %v1042_v7  ;;  %v148_v18 = vld [vmem:[#allocation5 + $0x190] sm:$0xff]  ;;  %v118_v23 = vld [vmem:[#allocation5 + $0xa0] sm:$0xff] }
  0x4f   :  { %1073 = vmatprep.subr.bf16.mxu1 %v1072_v8  ;;  %v1046_v17 = vpack.c.bf16 %v101_v15, %v100_v14  ;;  %v149_v19 = vld [vmem:[#allocation5 + $0x198] sm:$0xff]  ;;  %v132_v20 = vld [vmem:[#allocation5 + $0x110] sm:$0xff]  ;;  %v119_v24 = vld [vmem:[#allocation5 + $0xa8] sm:$0xff]  ;;  %1045 = vmatprep.subr.bf16.mxu0 %v1044_v16 }
  0x50   :  { %1075 = vmatpush3.bf16.msra.mxu1 %v1074_v12  ;;  %v1076_v21 = vpack.c.bf16 %v149_v19, %v148_v18  ;;  %v133_v22 = vld [vmem:[#allocation5 + $0x118] sm:$0xff]  ;;  %v1048_v26 = vpack.c.bf16 %v119_v24, %v118_v23  ;;  %v102_v27 = vld [vmem:[#allocation5 + $0x20] sm:$0xff]  ;;  %v103_v28 = vld [vmem:[#allocation5 + $0x28] sm:$0xff] }
  0x51   :  { %v1078_v25 = vpack.c.bf16 %v133_v22, %v132_v20  ;;  %v150_v29 = vld [vmem:[#allocation5 + $0x1a0] sm:$0xff]  ;;  %v151_v30 = vld [vmem:[#allocation5 + $0x1a8] sm:$0xff]  ;;  %v1050_v33 = vpack.c.bf16 %v103_v28, %v102_v27  ;;  %v120_v35 = vld [vmem:[#allocation5 + $0xb0] sm:$0xff] }
  0x52   :  { %1077 = vmatprep.subr.bf16.mxu1 %v1076_v21  ;;  %v134_v31 = vld [vmem:[#allocation5 + $0x120] sm:$0xff]  ;;  %v135_v32 = vld [vmem:[#allocation5 + $0x128] sm:$0xff]  ;;  %1047 = vmatpush3.bf16.msra.mxu0 %v1046_v17  ;;  %v1080_v34 = vpack.c.bf16 %v151_v30, %v150_v29  ;;  %v121_v36 = vld [vmem:[#allocation5 + $0xb8] sm:$0xff] }
  0x53   :  { %v104_v37 = vld [vmem:[#allocation5 + $0x30] sm:$0xff]  ;;  %1049 = vmatprep.subr.bf16.mxu0 %v1048_v26  ;;  %v1082_v38 = vpack.c.bf16 %v135_v32, %v134_v31  ;;  %v1052_v39 = vpack.c.bf16 %v121_v36, %v120_v35  ;;  %v105_v40 = vld [vmem:[#allocation5 + $0x38] sm:$0xff]  ;;  %v122_v46 = vld [vmem:[#allocation5 + $0xc0] sm:$0xff] }
  0x54   :  { %1079 = vmatpush3.bf16.msra.mxu1 %v1078_v25  ;;  %v152_v41 = vld [vmem:[#allocation5 + $0x1b0] sm:$0xff]  ;;  %v153_v42 = vld [vmem:[#allocation5 + $0x1b8] sm:$0xff]  ;;  %v123_v47 = vld [vmem:[#allocation5 + $0xc8] sm:$0xff]  ;;  %v1054_v48 = vpack.c.bf16 %v105_v40, %v104_v37 }
  0x55   :  { %1081 = vmatprep.subr.bf16.mxu1 %v1080_v34  ;;  %v1084_v43 = vpack.c.bf16 %v153_v42, %v152_v41  ;;  %v136_v44 = vld [vmem:[#allocation5 + $0x130] sm:$0xff]  ;;  %v137_v45 = vld [vmem:[#allocation5 + $0x138] sm:$0xff]  ;;  %v154_v49 = vld [vmem:[#allocation5 + $0x1c0] sm:$0xff]  ;;  %v1056_v52 = vpack.c.bf16 %v123_v47, %v122_v46 }
  0x56   :  { %1051 = vmatpush3.bf16.msra.mxu0 %v1050_v33  ;;  %v155_v50 = vld [vmem:[#allocation5 + $0x1c8] sm:$0xff]  ;;  %v1086_v51 = vpack.c.bf16 %v137_v45, %v136_v44  ;;  %v106_v53 = vld [vmem:[#allocation5 + $0x40] sm:$0xff]  ;;  %v124_v58 = vld [vmem:[#allocation5 + $0xd0] sm:$0xff] }
  0x57   :  { %1053 = vmatprep.subr.bf16.mxu0 %v1052_v39  ;;  %v107_v54 = vld [vmem:[#allocation5 + $0x48] sm:$0xff]  ;;  %v138_v55 = vld [vmem:[#allocation5 + $0x140] sm:$0xff]  ;;  %v1088_v56 = vpack.c.bf16 %v155_v50, %v154_v49  ;;  %v125_v59 = vld [vmem:[#allocation5 + $0xd8] sm:$0xff] }
  0x58   :  { %1083 = vmatpush3.bf16.msra.mxu1 %v1082_v38  ;;  %v139_v57 = vld [vmem:[#allocation5 + $0x148] sm:$0xff]  ;;  %v156_v60 = vld [vmem:[#allocation5 + $0x1d0] sm:$0xff]  ;;  %v157_v61 = vld [vmem:[#allocation5 + $0x1d8] sm:$0xff]  ;;  %v1058_v62 = vpack.c.bf16 %v107_v54, %v106_v53  ;;  %v1060_v0 = vpack.c.bf16 %v125_v59, %v124_v58 }
  0x59   :  { %1085 = vmatprep.subr.bf16.mxu1 %v1084_v43  ;;  %v1090_v63 = vpack.c.bf16 %v139_v57, %v138_v55  ;;  %v108_v1 = vld [vmem:[#allocation5 + $0x50] sm:$0xff]  ;;  %v109_v2 = vld [vmem:[#allocation5 + $0x58] sm:$0xff]  ;;  %v1092_v4 = vpack.c.bf16 %v157_v61, %v156_v60  ;;  %v126_v6 = vld [vmem:[#allocation5 + $0xe0] sm:$0xff] }
  0x5a   :  { %1055 = vmatpush3.bf16.msra.mxu0 %v1054_v48  ;;  %v140_v3 = vld [vmem:[#allocation5 + $0x150] sm:$0xff]  ;;  %v141_v5 = vld [vmem:[#allocation5 + $0x158] sm:$0xff]  ;;  %v127_v7 = vld [vmem:[#allocation5 + $0xe8] sm:$0xff]  ;;  %v1062_v10 = vpack.c.bf16 %v109_v2, %v108_v1 }
  0x5b   :  { %1057 = vmatprep.subr.bf16.mxu0 %v1056_v52  ;;  %v158_v8 = vld [vmem:[#allocation5 + $0x1e0] sm:$0xff]  ;;  %v159_v9 = vld [vmem:[#allocation5 + $0x1e8] sm:$0xff]  ;;  %v1094_v13 = vpack.c.bf16 %v141_v5, %v140_v3  ;;  %v1064_v14 = vpack.c.bf16 %v127_v7, %v126_v6  ;;  %v128_v19 = vld [vmem:[#allocation5 + $0xf0] sm:$0xff] }
  0x5c   :  { %1087 = vmatpush3.bf16.msra.mxu1 %v1086_v51  ;;  %v110_v11 = vld [vmem:[#allocation5 + $0x60] sm:$0xff]  ;;  %v111_v12 = vld [vmem:[#allocation5 + $0x68] sm:$0xff]  ;;  %v1096_v18 = vpack.c.bf16 %v159_v9, %v158_v8  ;;  %v129_v20 = vld [vmem:[#allocation5 + $0xf8] sm:$0xff] }
  0x5d   :  { %1089 = vmatprep.subr.bf16.mxu1 %v1088_v56  ;;  %v142_v15 = vld [vmem:[#allocation5 + $0x160] sm:$0xff]  ;;  %v143_v16 = vld [vmem:[#allocation5 + $0x168] sm:$0xff]  ;;  %v85_v21 = vld [vmem:[#allocation2 + $0x18] sm:$0xff]  ;;  %v1066_v24 = vpack.c.bf16 %v111_v12, %v110_v11  ;;  %v1068_v26 = vpack.c.bf16 %v129_v20, %v128_v19 }
  0x5e   :  { %1059 = vmatpush3.bf16.msra.mxu0 %v1058_v62  ;;  %v83_v17 = vld [vmem:[#allocation2 + $0x8] sm:$0xff]  ;;  %v160_v22 = vld [vmem:[#allocation5 + $0x1f0] sm:$0xff]  ;;  %v161_v23 = vld [vmem:[#allocation5 + $0x1f8] sm:$0xff]  ;;  %372 = vmatprep.mubr.f32.mxu1 %v85_v21  ;;  %v1098_v25 = vpack.c.bf16 %v143_v16, %v142_v15 }
  0x5f   :  { %1061 = vmatprep.subr.bf16.mxu0 %v1060_v0  ;;  %297 = vmatprep.mubr.f32.mxu0 %v83_v17  ;;  %v112_v27 = vld [vmem:[#allocation5 + $0x70] sm:$0xff]  ;;  %v113_v28 = vld [vmem:[#allocation5 + $0x78] sm:$0xff]  ;;  %v1100_v30 = vpack.c.bf16 %v161_v23, %v160_v22  ;;  %v178_v32 = vld [vmem:[#allocation5 + $0x280] sm:$0xff] }
  0x60   :  { %1091 = vmatpush3.bf16.msra.mxu1 %v1090_v63  ;;  %v144_v29 = vld [vmem:[#allocation5 + $0x170] sm:$0xff]  ;;  %v145_v31 = vld [vmem:[#allocation5 + $0x178] sm:$0xff]  ;;  %v179_v33 = vld [vmem:[#allocation5 + $0x288] sm:$0xff]  ;;  %v1070_v36 = vpack.c.bf16 %v113_v28, %v112_v27 }
  0x61   :  { %1093 = vmatprep.subr.bf16.mxu1 %v1092_v4  ;;  %v210_v34 = vld [vmem:[#allocation5 + $0x380] sm:$0xff]  ;;  %v211_v35 = vld [vmem:[#allocation5 + $0x388] sm:$0xff]  ;;  %v1102_v37 = vpack.c.bf16 %v145_v31, %v144_v29  ;;  %v1104_v38 = vpack.c.bf16 %v179_v33, %v178_v32  ;;  %v180_v44 = vld [vmem:[#allocation5 + $0x290] sm:$0xff] }
  0x62   :  { %1063 = vmatpush3.bf16.msra.mxu0 %v1062_v10  ;;  %v162_v39 = vld [vmem:[#allocation5 + $0x200] sm:$0xff]  ;;  %v163_v40 = vld [vmem:[#allocation5 + $0x208] sm:$0xff]  ;;  %v1136_v42 = vpack.c.bf16 %v211_v35, %v210_v34  ;;  %v181_v45 = vld [vmem:[#allocation5 + $0x298] sm:$0xff] }
  0x63   :  { %1065 = vmatprep.subr.bf16.mxu0 %v1064_v14  ;;  %v194_v41 = vld [vmem:[#allocation5 + $0x300] sm:$0xff]  ;;  %v195_v43 = vld [vmem:[#allocation5 + $0x308] sm:$0xff]  ;;  %v212_v46 = vld [vmem:[#allocation5 + $0x390] sm:$0xff]  ;;  %v1106_v49 = vpack.c.bf16 %v163_v40, %v162_v39  ;;  %v1108_v52 = vpack.c.bf16 %v181_v45, %v180_v44 }
  0x64   :  { %1095 = vmatpush3.bf16.msra.mxu1 %v1094_v13  ;;  %v213_v47 = vld [vmem:[#allocation5 + $0x398] sm:$0xff]  ;;  %v82_v48 = vld [vmem:[#allocation2] sm:$0xff]  ;;  %v84_v50 = vld [vmem:[#allocation2 + $0x10] sm:$0xff]  ;;  %v1138_v51 = vpack.c.bf16 %v195_v43, %v194_v41 }
  0x65   :  { %1097 = vmatprep.subr.bf16.mxu1 %v1096_v18  ;;  %v164_v53 = vld [vmem:[#allocation5 + $0x210] sm:$0xff]  ;;  %v165_v54 = vld [vmem:[#allocation5 + $0x218] sm:$0xff]  ;;  %v1140_v56 = vpack.c.bf16 %v213_v47, %v212_v46  ;;  %v182_v58 = vld [vmem:[#allocation5 + $0x2a0] sm:$0xff] }
  0x66   :  { %1067 = vmatpush3.bf16.msra.mxu0 %v1066_v24  ;;  %v196_v55 = vld [vmem:[#allocation5 + $0x310] sm:$0xff]  ;;  %v197_v57 = vld [vmem:[#allocation5 + $0x318] sm:$0xff]  ;;  %v183_v59 = vld [vmem:[#allocation5 + $0x2a8] sm:$0xff]  ;;  %v1110_v62 = vpack.c.bf16 %v165_v54, %v164_v53 }
  0x67   :  { %1069 = vmatprep.subr.bf16.mxu0 %v1068_v26  ;;  %v214_v60 = vld [vmem:[#allocation5 + $0x3a0] sm:$0xff]  ;;  %v215_v61 = vld [vmem:[#allocation5 + $0x3a8] sm:$0xff]  ;;  %v1142_v63 = vpack.c.bf16 %v197_v57, %v196_v55  ;;  %v1112_v0 = vpack.c.bf16 %v183_v59, %v182_v58  ;;  %v184_v6 = vld [vmem:[#allocation5 + $0x2b0] sm:$0xff] }
  0x68   :  { %1099 = vmatpush3.bf16.msra.mxu1 %v1098_v25  ;;  %v166_v1 = vld [vmem:[#allocation5 + $0x220] sm:$0xff]  ;;  %v167_v2 = vld [vmem:[#allocation5 + $0x228] sm:$0xff]  ;;  %v1144_v4 = vpack.c.bf16 %v215_v61, %v214_v60  ;;  %v185_v7 = vld [vmem:[#allocation5 + $0x2b8] sm:$0xff] }
  0x69   :  { %1101 = vmatprep.subr.bf16.mxu1 %v1100_v30  ;;  %v198_v3 = vld [vmem:[#allocation5 + $0x320] sm:$0xff]  ;;  %v199_v5 = vld [vmem:[#allocation5 + $0x328] sm:$0xff]  ;;  %v216_v8 = vld [vmem:[#allocation5 + $0x3b0] sm:$0xff]  ;;  %v1114_v10 = vpack.c.bf16 %v167_v2, %v166_v1  ;;  %v1116_v15 = vpack.c.bf16 %v185_v7, %v184_v6 }
  0x6a   :  { %1071 = vmatpush3.bf16.msra.mxu0 %v1070_v36  ;;  %v217_v9 = vld [vmem:[#allocation5 + $0x3b8] sm:$0xff]  ;;  %v168_v11 = vld [vmem:[#allocation5 + $0x230] sm:$0xff]  ;;  %v91_v13 = vld [vmem:[#allocation2 + $0x48] sm:$0xff]  ;;  %v1146_v14 = vpack.c.bf16 %v199_v5, %v198_v3 }
  0x6b   :  { %1105 = vmatprep.subr.bf16.mxu0 %v1104_v38  ;;  %v169_v12 = vld [vmem:[#allocation5 + $0x238] sm:$0xff]  ;;  %v200_v16 = vld [vmem:[#allocation5 + $0x330] sm:$0xff]  ;;  %v90_v18 = vld [vmem:[#allocation2 + $0x40] sm:$0xff]  ;;  %v1148_v19 = vpack.c.bf16 %v217_v9, %v216_v8 }
  0x6c   :  { %1103 = vmatpush3.bf16.msra.mxu1 %v1102_v37  ;;  %v201_v17 = vld [vmem:[#allocation5 + $0x338] sm:$0xff]  ;;  %v186_v20 = vld [vmem:[#allocation5 + $0x2c0] sm:$0xff]  ;;  %v187_v21 = vld [vmem:[#allocation5 + $0x2c8] sm:$0xff]  ;;  %v1118_v26 = vpack.c.bf16 %v169_v12, %v168_v11 }
  0x6d   :  { %1137 = vmatprep.subr.bf16.mxu1 %v1136_v42  ;;  %298 = vmatmul.mubr.f32.vlgmr.msra.gmra.mrb[0].mxu0 %v82_v48  ;;  %v93_v22 = vld [vmem:[#allocation2 + $0x58] sm:$0xff]  ;;  %v218_v23 = vld [vmem:[#allocation5 + $0x3c0] sm:$0xff]  ;;  %v219_v24 = vld [vmem:[#allocation5 + $0x3c8] sm:$0xff]  ;;  %v1150_v29 = vpack.c.bf16 %v201_v17, %v200_v16  ;;  %v1120_v30 = vpack.c.bf16 %v187_v21, %v186_v20 }
  0x6e   :  { %1107 = vmatpush3.bf16.msra.mxu0 %v1106_v49  ;;  %302 = vmatprep.mubr.f32.mxu0 %v91_v13  ;;  %v92_v25 = vld [vmem:[#allocation2 + $0x50] sm:$0xff]  ;;  %v170_v27 = vld [vmem:[#allocation5 + $0x240] sm:$0xff]  ;;  %v171_v28 = vld [vmem:[#allocation5 + $0x248] sm:$0xff]  ;;  %v1152_v34 = vpack.c.bf16 %v219_v24, %v218_v23 }
  0x6f   :  { %373 = vmatmul.mubr.f32.vlgmr.msra.gmra.mrb[0].mxu1 %v84_v50  ;;  %1109 = vmatprep.subr.bf16.mxu0 %v1108_v52  ;;  %v202_v31 = vld [vmem:[#allocation5 + $0x340] sm:$0xff]  ;;  %v203_v32 = vld [vmem:[#allocation5 + $0x348] sm:$0xff]  ;;  %v188_v35 = vld [vmem:[#allocation5 + $0x2d0] sm:$0xff]  ;;  %v1122_v40 = vpack.c.bf16 %v171_v28, %v170_v27 }
  0x70   :  { %1139 = vmatpush3.bf16.msra.mxu1 %v1138_v51  ;;  %377 = vmatprep.mubr.f32.mxu1 %v93_v22  ;;  %v87_v33 = vld [vmem:[#allocation2 + $0x28] sm:$0xff]  ;;  %v189_v36 = vld [vmem:[#allocation5 + $0x2d8] sm:$0xff]  ;;  %v220_v38 = vld [vmem:[#allocation5 + $0x3d0] sm:$0xff]  ;;  %v1154_v41 = vpack.c.bf16 %v203_v32, %v202_v31 }
  0x71   :  { %1141 = vmatprep.subr.bf16.mxu1 %v1140_v56  ;;  %303 = vmatmul.mubr.f32.gmra.mrb[2].mxu0 %v90_v18  ;;  %v89_v37 = vld [vmem:[#allocation2 + $0x38] sm:$0xff]  ;;  %v1124_v42 = vpack.c.bf16 %v189_v36, %v188_v35  ;;  %v172_v43 = vld [vmem:[#allocation5 + $0x250] sm:$0xff]  ;;  %v190_v48 = vld [vmem:[#allocation5 + $0x2e0] sm:$0xff] }
  0x72   :  { %1111 = vmatpush3.bf16.msra.mxu0 %v1110_v62  ;;  %447 = vmatprep.mubr.f32.mxu0 %v87_v33  ;;  %v221_v39 = vld [vmem:[#allocation5 + $0x3d8] sm:$0xff]  ;;  %v204_v45 = vld [vmem:[#allocation5 + $0x350] sm:$0xff]  ;;  %v191_v49 = vld [vmem:[#allocation5 + $0x2e8] sm:$0xff] }
  0x73   :  { %1113 = vmatprep.subr.bf16.mxu0 %v1112_v0  ;;  %378 = vmatmul.mubr.f32.gmra.mrb[2].mxu1 %v92_v25  ;;  %v173_v44 = vld [vmem:[#allocation5 + $0x258] sm:$0xff]  ;;  %v1156_v46 = vpack.c.bf16 %v221_v39, %v220_v38  ;;  %v222_v50 = vld [vmem:[#allocation5 + $0x3e0] sm:$0xff]  ;;  %v223_v51 = vld [vmem:[#allocation5 + $0x3e8] sm:$0xff]  ;;  %v1128_v54 = vpack.c.bf16 %v191_v49, %v190_v48 }
  0x74   :  { %1143 = vmatpush3.bf16.msra.mxu1 %v1142_v63  ;;  %522 = vmatprep.mubr.f32.mxu1 %v89_v37  ;;  %v205_v47 = vld [vmem:[#allocation5 + $0x358] sm:$0xff]  ;;  %v1126_v52 = vpack.c.bf16 %v173_v44, %v172_v43  ;;  %v174_v55 = vld [vmem:[#allocation5 + $0x260] sm:$0xff]  ;;  %v175_v56 = vld [vmem:[#allocation5 + $0x268] sm:$0xff]  ;;  %v1160_v58 = vpack.c.bf16 %v223_v51, %v222_v50 }
  0x75   :  { %1145 = vmatprep.subr.bf16.mxu1 %v1144_v4  ;;  %v1158_v53 = vpack.c.bf16 %v205_v47, %v204_v45  ;;  %v206_v57 = vld [vmem:[#allocation5 + $0x360] sm:$0xff]  ;;  %v207_v59 = vld [vmem:[#allocation5 + $0x368] sm:$0xff]  ;;  %v192_v60 = vld [vmem:[#allocation5 + $0x2f0] sm:$0xff]  ;;  %v1130_v0 = vpack.c.bf16 %v175_v56, %v174_v55 }
  0x76   :  { %1115 = vmatpush3.bf16.msra.mxu0 %v1114_v10  ;;  %v193_v61 = vld [vmem:[#allocation5 + $0x2f8] sm:$0xff]  ;;  %v224_v62 = vld [vmem:[#allocation5 + $0x3f0] sm:$0xff]  ;;  %v1162_v1 = vpack.c.bf16 %v207_v59, %v206_v57  ;;  %v86_v10 = vld [vmem:[#allocation2 + $0x20] sm:$0xff] }
  0x77   :  { %1117 = vmatprep.subr.bf16.mxu0 %v1116_v15  ;;  %v225_v63 = vld [vmem:[#allocation5 + $0x3f8] sm:$0xff]  ;;  %v1132_v2 = vpack.c.bf16 %v193_v61, %v192_v60  ;;  %v176_v3 = vld [vmem:[#allocation5 + $0x270] sm:$0xff]  ;;  %v95_v12 = vld [vmem:[#allocation2 + $0x68] sm:$0xff] }
  0x78   :  { %1147 = vmatpush3.bf16.msra.mxu1 %v1146_v14  ;;  %v177_v4 = vld [vmem:[#allocation5 + $0x278] sm:$0xff]  ;;  %v1164_v5 = vpack.c.bf16 %v225_v63, %v224_v62  ;;  %v208_v6 = vld [vmem:[#allocation5 + $0x370] sm:$0xff]  ;;  %v94_v14 = vld [vmem:[#allocation2 + $0x60] sm:$0xff] }
  0x79   :  { %1149 = vmatprep.subr.bf16.mxu1 %v1148_v19  ;;  %v209_v7 = vld [vmem:[#allocation5 + $0x378] sm:$0xff]  ;;  %v1134_v8 = vpack.c.bf16 %v177_v4, %v176_v3  ;;  %v88_v11 = vld [vmem:[#allocation2 + $0x30] sm:$0xff]  ;;  %v535_v16 = vld [vmem:[#allocation7] sm:$0xff] }
  0x7a   :  { %1119 = vmatpush3.bf16.msra.mxu0 %v1118_v26  ;;  %v1166_v9 = vpack.c.bf16 %v209_v7, %v208_v6  ;;  %v97_v13 = vld [vmem:[#allocation2 + $0x78] sm:$0xff]  ;;  %v96_v15 = vld [vmem:[#allocation2 + $0x70] sm:$0xff]  ;;  %v536_v17 = vld [vmem:[#allocation7 + $0x8] sm:$0xff] }
  0x7b   :  { %1121 = vmatprep.subr.bf16.mxu0 %v1120_v30  ;;  %v537_v18 = vld [vmem:[#allocation7 + $0x10] sm:$0xff]  ;;  %v1168_v19 = vpack.c.bf16 %v536_v17, %v535_v16  ;;  %v538_v20 = vld [vmem:[#allocation7 + $0x18] sm:$0xff]  ;;  %v539_v22 = vld [vmem:[#allocation7 + $0x20] sm:$0xff] }
  0x7c   :  { %1151 = vmatpush3.bf16.msra.mxu1 %v1150_v29  ;;  %v1172_v21 = vpack.c.bf16 %v538_v20, %v537_v18  ;;  %v540_v23 = vld [vmem:[#allocation7 + $0x28] sm:$0xff]  ;;  %v541_v25 = vld [vmem:[#allocation7 + $0x30] sm:$0xff]  ;;  %v542_v26 = vld [vmem:[#allocation7 + $0x38] sm:$0xff] }
  0x7d   :  { %1153 = vmatprep.subr.bf16.mxu1 %v1152_v34  ;;  %v1176_v24 = vpack.c.bf16 %v540_v23, %v539_v22  ;;  %v1180_v27 = vpack.c.bf16 %v542_v26, %v541_v25  ;;  %v543_v28 = vld [vmem:[#allocation7 + $0x40] sm:$0xff]  ;;  %v544_v29 = vld [vmem:[#allocation7 + $0x48] sm:$0xff]  ;;  %v545_v31 = vld [vmem:[#allocation7 + $0x50] sm:$0xff] }
  0x7e   :  { %1123 = vmatpush3.bf16.msra.mxu0 %v1122_v40  ;;  %v1184_v30 = vpack.c.bf16 %v544_v29, %v543_v28  ;;  %v546_v32 = vld [vmem:[#allocation7 + $0x58] sm:$0xff]  ;;  %v547_v34 = vld [vmem:[#allocation7 + $0x60] sm:$0xff]  ;;  %v548_v35 = vld [vmem:[#allocation7 + $0x68] sm:$0xff] }
  0x7f   :  { %1125 = vmatprep.subr.bf16.mxu0 %v1124_v42  ;;  %v1188_v33 = vpack.c.bf16 %v546_v32, %v545_v31  ;;  %v1192_v36 = vpack.c.bf16 %v548_v35, %v547_v34  ;;  %v549_v37 = vld [vmem:[#allocation7 + $0x70] sm:$0xff]  ;;  %v550_v38 = vld [vmem:[#allocation7 + $0x78] sm:$0xff]  ;;  %v635_v40 = vld [vmem:[#allocation8] sm:$0xff] }
  0x80   :  { %1155 = vmatpush3.bf16.msra.mxu1 %v1154_v41  ;;  %v1196_v39 = vpack.c.bf16 %v550_v38, %v549_v37  ;;  %v636_v41 = vld [vmem:[#allocation8 + $0x8] sm:$0xff]  ;;  %v637_v42 = vld [vmem:[#allocation8 + $0x10] sm:$0xff]  ;;  %v638_v44 = vld [vmem:[#allocation8 + $0x18] sm:$0xff] }
  0x81   :  { %1157 = vmatprep.subr.bf16.mxu1 %v1156_v46  ;;  %v1200_v43 = vpack.c.bf16 %v636_v41, %v635_v40  ;;  %v1204_v45 = vpack.c.bf16 %v638_v44, %v637_v42  ;;  %v639_v46 = vld [vmem:[#allocation8 + $0x20] sm:$0xff]  ;;  %v640_v47 = vld [vmem:[#allocation8 + $0x28] sm:$0xff]  ;;  %v641_v49 = vld [vmem:[#allocation8 + $0x30] sm:$0xff]  ;;  %v733_v42 = vlaneseq }
  0x82   :  { %1127 = vmatpush3.bf16.msra.mxu0 %v1126_v52  ;;  %v1208_v48 = vpack.c.bf16 %v640_v47, %v639_v46  ;;  %v642_v50 = vld [vmem:[#allocation8 + $0x38] sm:$0xff]  ;;  %v643_v52 = vld [vmem:[#allocation8 + $0x40] sm:$0xff]  ;;  %v645_v55 = vld [vmem:[#allocation8 + $0x50] sm:$0xff] }
  0x83   :  { %1129 = vmatprep.subr.bf16.mxu0 %v1128_v54  ;;  %v1212_v51 = vpack.c.bf16 %v642_v50, %v641_v49  ;;  %v646_v56 = vld [vmem:[#allocation8 + $0x58] sm:$0xff]  ;;  %v648_v59 = vld [vmem:[#allocation8 + $0x68] sm:$0xff]  ;;  %v779_v62 = vld [vmem:[%s1506_s2] ss:$0 sm:$0xff] }
  0x84   :  { %1159 = vmatpush3.bf16.msra.mxu1 %v1158_v53  ;;  %v644_v53 = vld [vmem:[#allocation8 + $0x48] sm:$0xff]  ;;  %v1220_v57 = vpack.c.bf16 %v646_v56, %v645_v55  ;;  %v649_v32 = vld [vmem:[#allocation8 + $0x70] sm:$0xff]  ;;  %v780_v35 = vld [vmem:[%s1508_s4] ss:$0 sm:$0xff]  ;;  %s1375_s4 = smov [#allocation10]  }
  0x85   :  { %1161 = vmatprep.subr.bf16.mxu1 %v1160_v58  ;;  %v1216_v54 = vpack.c.bf16 %v644_v53, %v643_v52  ;;  %v647_v58 = vld [vmem:[#allocation8 + $0x60] sm:$0xff] }
  0x86   :  { %1131 = vmatpush3.bf16.msra.mxu0 %v1130_v0  ;;  %v1224_v60 = vpack.c.bf16 %v648_v59, %v647_v58  ;;  %v781_v44 = vld [vmem:[%s1510_s6] ss:$0 sm:$0xff]  ;;  %s765_s6 = sshll.u32 %s1375_s4, 4  ;;  %s766_s6 = int_to_ptr.vmem [resolvable:$true] %s765_s6 }
  0x87   :  { %1133 = vmatprep.subr.bf16.mxu0 %v1132_v2  ;;  %s1337_s9 = scalar_lea.vmem %s766_s6, 256  ;;  %p1342_p5 = scmp.lt.s32.totalorder %s766_s6, %s766_s6 }
  0x88   :  { %1163 = vmatpush3.bf16.msra.mxu1 %v1162_v1  ;;  %p1338_p4 = scmp.ne.s32.totalorder %s766_s6, %s1337_s9  ;;  %p1343_p6 = scmp.lt.s32.totalorder %s1337_s9, %s1337_s9 }
  0x89   :  { %1165 = vmatprep.subr.bf16.mxu1 %v1164_v5 }
  0x8a   :  { %1135 = vmatpush3.bf16.msra.mxu0 %v1134_v8  ;;  %p1344_p7 = por %p1343_p6, %p1342_p5 }
  0x8b   :  { %1169 = vmatprep.subr.bf16.mxu0 %v1168_v19 }
  0x8c   :  { %1167 = vmatpush3.bf16.msra.mxu1 %v1166_v9  ;;  %p1345_p8 = pnand %p1344_p7, %p1338_p4 }
  0x8d   :  { %448 = vmatmul.mubr.f32.vlgmr.msra.gmra.mrb[4].mxu0 %v86_v10  ;;  %1201 = vmatprep.subr.bf16.mxu1 %v1200_v43 }
  0x8e   :  { %452 = vmatprep.mubr.f32.mxu0 %v95_v12  ;;  %1171 = vmatpush3.bf16.msra.mxu0 %v1168_v19 }
  0x8f   :  { %523 = vmatmul.mubr.f32.vlgmr.msra.gmra.mrb[4].mxu1 %v88_v11  ;;  %1173 = vmatprep.subr.bf16.mxu0 %v1172_v21 }
  0x90   :  { %527 = vmatprep.mubr.f32.mxu1 %v97_v13  ;;  %1203 = vmatpush3.bf16.msra.mxu1 %v1200_v43  ;;  %v734_v43 = vand.u32 127, %v733_v42 }
  0x91   :  { %453 = vmatmul.mubr.f32.gmra.mrb[6].mxu0 %v94_v14  ;;  %1205 = vmatprep.subr.bf16.mxu1 %v1204_v45 }
  0x92   :  { %1175 = vmatpush3.bf16.msra.mxu0 %v1172_v21  ;;  %vm735_vm0 = vcmp.lt.s32.totalorder %v734_v43, 10 }
  0x93   :  { %528 = vmatmul.mubr.f32.gmra.mrb[6].mxu1 %v96_v15  ;;  %1177 = vmatprep.subr.bf16.mxu0 %v1176_v24 }
  0x94   :  { %1207 = vmatpush3.bf16.msra.mxu1 %v1204_v45 }
  0x95   :  { %1209 = vmatprep.subr.bf16.mxu1 %v1208_v48 }
  0x96   :  { %1179 = vmatpush3.bf16.msra.mxu0 %v1176_v24 }
  0x97   :  { %1181 = vmatprep.subr.bf16.mxu0 %v1180_v27 }
  0x98   :  { %1211 = vmatpush3.bf16.msra.mxu1 %v1208_v48 }
  0x99   :  { %1213 = vmatprep.subr.bf16.mxu1 %v1212_v51 }
  0x9a   :  { %1183 = vmatpush3.bf16.msra.mxu0 %v1180_v27 }
  0x9b   :  { %1185 = vmatprep.subr.bf16.mxu0 %v1184_v30 }
  0x9c   :  { %1215 = vmatpush3.bf16.msra.mxu1 %v1212_v51 }
  0x9d   :  { %1217 = vmatprep.subr.bf16.mxu1 %v1216_v54 }
  0x9e   :  { %1187 = vmatpush3.bf16.msra.mxu0 %v1184_v30 }
  0x9f   :  { %1189 = vmatprep.subr.bf16.mxu0 %v1188_v33 }
  0xa0   :  { %1219 = vmatpush3.bf16.msra.mxu1 %v1216_v54 }
  0xa1   :  { %1221 = vmatprep.subr.bf16.mxu1 %v1220_v57 }
  0xa2   :  { %1191 = vmatpush3.bf16.msra.mxu0 %v1188_v33  ;;  %v650_v33 = vld [vmem:[#allocation8 + $0x78] sm:$0xff] }
  0xa3   :  { %1193 = vmatprep.subr.bf16.mxu0 %v1192_v36  ;;  %v1228_v34 = vpack.c.bf16 %v650_v33, %v649_v32 }
  0xa4   :  { %1223 = vmatpush3.bf16.msra.mxu1 %v1220_v57 }
  0xa5   :  { %1225 = vmatprep.subr.bf16.mxu1 %v1224_v60 }
  0xa6   :  { %1195 = vmatpush3.bf16.msra.mxu0 %v1192_v36 }
  0xa7   :  { %1197 = vmatprep.subr.bf16.mxu0 %v1196_v39 }
  0xa8   :  { %1227 = vmatpush3.bf16.msra.mxu1 %v1224_v60 }
  0xa9   :  { %1229 = vmatprep.subr.bf16.mxu1 %v1228_v34 }
  0xaa   :  { %1199 = vmatpush3.bf16.msra.mxu0 %v1196_v39 }
  0xac   :  { %1231 = vmatpush3.bf16.msra.mxu1 %v1228_v34 }
 0x140   :  { %v814_v61 = vpop.f32.mrb[0].mxu0 }
 0x141   :  { %v815_v63 = vpop.f32.mrb[1].mxu0 }
 0x142   :  { %v852_v0 = vpop.f32.mrb[0].mxu1  ;;  %v816_v1 = vadd.f32 %v815_v63, %v814_v61 }
 0x143   :  { %v853_v2 = vpop.f32.mrb[1].mxu1 }
 0x144   :  { %v854_v3 = vadd.f32 %v853_v2, %v852_v0  ;;  %v300_v4 = vadd.f32 %v816_v1, %v779_v62  ;;  %v817_v6 = vpop.f32.mrb[2].mxu0 }
 0x145   :  { %v818_v7 = vpop.f32.mrb[3].mxu0 }
 0x146   :  { %v375_v5 = vadd.f32 %v854_v3, %v300_v4  ;;  %v855_v8 = vpop.f32.mrb[2].mxu1  ;;  %v819_v9 = vadd.f32 %v818_v7, %v817_v6 }
 0x147   :  { %v856_v10 = vpop.f32.mrb[3].mxu1 }
 0x148   :  { %v857_v11 = vadd.f32 %v856_v10, %v855_v8  ;;  %v305_v12 = vadd.f32 %v819_v9, %v779_v62 }
 0x14a   :  { %v380_v13 = vadd.f32 %v857_v11, %v305_v12 }
 0x160   :  { %v890_v14 = vpop.f32.mrb[4].mxu0 }
 0x161   :  { %v891_v15 = vpop.f32.mrb[5].mxu0 }
 0x162   :  { %v928_v16 = vpop.f32.mrb[4].mxu1  ;;  %v892_v17 = vadd.f32 %v891_v15, %v890_v14 }
 0x163   :  { %v929_v18 = vpop.f32.mrb[5].mxu1 }
 0x164   :  { %v930_v19 = vadd.f32 %v929_v18, %v928_v16  ;;  %v450_v20 = vadd.f32 %v892_v17, %v375_v5  ;;  %v893_v21 = vpop.f32.mrb[6].mxu0 }
 0x165   :  { %v894_v22 = vpop.f32.mrb[7].mxu0 }
 0x166   :  { %v931_v23 = vpop.f32.mrb[6].mxu1  ;;  %v525_v24 = vadd.f32 %v930_v19, %v450_v20  ;;  %v895_v25 = vadd.f32 %v894_v22, %v893_v21 }
 0x167   :  { %v932_v26 = vpop.f32.mrb[7].mxu1 }
 0x168   :  { %v933_v27 = vadd.f32 %v932_v26, %v931_v23  ;;  %v533_v28 = vmax.f32 %v525_v24, 0.0  ;;  %v455_v29 = vadd.f32 %v895_v25, %v380_v13 }
 0x16a   :  { %v530_v30 = vadd.f32 %v933_v27, %v455_v29  ;;  %1002 = vmatprep.mubr.f32.mxu0 %v533_v28 }
 0x16c   :  { %v534_v31 = vmax.f32 %v530_v30, 0.0 }
 0x16e   :  { %1003 = vmatmul.mubr.f32.vlgmr.msra.gmra.mrb[8].mxu0 %v534_v31 }
 0x241   :  { %v1004_v36 = vpop.f32.mrb[8].mxu0 }
 0x242   :  { %v630_v37 = vadd.f32 %v1004_v36, %v780_v35  ;;  %v624_v38 = vpop.f32.mrb[9].mxu0 }
 0x243   :  { %v625_v39 = vadd.f32 %v780_v35, %v624_v38 }
 0x244   :  { %v634_v41 = vmax.f32 %v630_v37, 0.0 }
 0x245   :  { %v633_v40 = vmax.f32 %v625_v39, 0.0 }
 0x247   :  { %1037 = vmatprep.mubr.f32.mxu1 %v633_v40 }
 0x248   :  { %1038 = vmatmul.mubr.f32.vlgmr.msra.gmra.mrb[8].mxu1 %v634_v41 }
 0x31b   :  { %v1039_v45 = vpop.f32.mrb[8].mxu1 }
 0x31c   :  { %v724_v46 = vpop.f32.mrb[9].mxu1  ;;  %v730_v48 = vadd.f32 %v1039_v45, %v781_v44 }
 0x31d   :  { %v725_v47 = vadd.f32 %v781_v44, %v724_v46 }
 0x31e   :  { %v737_v50 = vsel %vm735_vm0, %v730_v48, -inf }
 0x31f   :  { %v736_v49 = vsel %vm735_vm0, %v725_v47, -inf }
 0x320   :  { %738 = vmax.xlane.f32.xlu0 %v736_v49 }
 0x324   :  { %740 = vmax.xlane.f32.xlu0 %v737_v50 }
 0x3ad   :  { %v739_v51 = vpop.xlane.xlu0 %738 }
 0x3ae   :  { %v742_v52 = vsub.f32 %v736_v49, %v739_v51 }
 0x3b0   :  { %v744_v53 = vmul.f32 1.442695, %v742_v52 }
 0x3b1   :  { %v741_v54 = vpop.xlane.xlu0 %740 }
 0x3b2   :  { %v743_v55 = vsub.f32 %v737_v50, %v741_v54  ;;  %1241 = vpow2.f32 %v744_v53 }
 0x3b4   :  { %v746_v56 = vmul.f32 1.442695, %v743_v55 }
 0x3b6   :  { %1243 = vpow2.f32 %v746_v56 }
 0x3bc   :  { %v1242_v57 = vpop.eup %1241 }
 0x3bd   :  { %748 = vadd.xlane.f32.xlu1 %v1242_v57 }
 0x3c0   :  { %v1244_v58 = vpop.eup %1243 }
 0x3c1   :  { %750 = vadd.xlane.f32.xlu1 %v1244_v58 }
 0x44a   :  { %v749_v59 = vpop.xlane.xlu1 %748 }
 0x44b   :  { %1245 = vlog2.f32 %v749_v59 }
 0x44e   :  { %v751_v60 = vpop.xlane.xlu1 %750 }
 0x44f   :  { %1247 = vlog2.f32 %v751_v60 }
 0x455   :  { %v1246_v61 = vpop.eup %1245 }
 0x456   :  { %v753_v62 = vmul.f32 0.6931472, %v1246_v61 }
 0x458   :  { %v756_v63 = vsub.f32 %v742_v52, %v753_v62 }
 0x459   :  { %v1248_v0 = vpop.eup %1247 }
 0x45a   :  { %758 = vst [vmem:[#allocation10] sm:$0xff] %v756_v63  ;;  %v755_v1 = vmul.f32 0.6931472, %v1248_v0 }
 0x45c   :  { %v757_v2 = vsub.f32 %v743_v55, %v755_v1 }
 0x45e   :  { %759 = vst [vmem:[#allocation10 + $0x8] sm:$0xff] %v757_v2 }
 0x45f   :  { %1348 = shalt.err (!%p1345_p8)
}
 0x460   :  { %s1349_s14 = scalar_lea.hbm %s1511_s7, 256 }
 0x461   :  { %p1350_p9 = scmp.ne.s32.totalorder %s1511_s7, %s1349_s14  ;;  %p1353_p10 = scmp.lt.u32.totalorder %s1349_s14, %s1511_s7 }
 0x463   :  { %p1355_p11 = pnand %p1353_p10, %p1350_p9 }
 0x465   :  { %1358 = shalt.err (!%p1355_p11)
}
 0x466   :  { %771 = dma.vmem_to_hbm [thread:$0]  %s766_s6, 256, %s1511_s7, [#allocation4], %s1368_s11, %s1368_s11, %s1369_s12  }
 0x467   :  { %1365 = dma.done.wait [#allocation4], 256  }
 0x468   :  { %1366 = vsyncadd [#allocation4], 4294967040 }
 0x469   :  { %775 = vsyncpa [#allocation3], 1 }
 0x46a   :  { %776 = vsyncpa [#allocation6], 1 }
 0x46b   :  { %777 = vsyncpa [#allocation9], 1 }
 0x46c   :  { %778 = vsyncpa [#allocation4], 1 }

</bundles_post_ra>
